<compile_context>
chip_gen: v5e
topology: v5e:2x2
jax: 0.10.0
libtpu: 0.0.40
codegen_flags: <defaults>
</compile_context>

<pallas_src>
import functools

import jax
import jax.numpy as jnp
from jax.experimental import pallas as pl
from jax.experimental.pallas import tpu as pltpu


def _layernorm(x, gamma, beta, eps=1e-5):
    mean = jnp.mean(x, axis=-1, keepdims=True)
    var = jnp.mean((x - mean) ** 2, axis=-1, keepdims=True)  # biased var (PyTorch LayerNorm)
    return (x - mean) * jax.lax.rsqrt(var + eps) * gamma + beta


def encoder_block_kernel(
    x_ref, mask_ref,
    wq_ref, bq_ref, wk_ref, bk_ref, wv_ref, bv_ref,
    wz_ref, bz_ref, g1_ref, be1_ref,
    w1_ref, b1_ref, w2_ref, b2_ref,
    g2_ref, be2_ref,
    out_ref,
    *, head, q_k_size, v_size, seq, ffn_block,
):
    m, e = x_ref.shape          # M = bt * S rows per grid step
    s = seq
    bt = m // s
    dk, dv = q_k_size, v_size

    x_f32 = x_ref[...]                         # (M, E) f32, kept for residual / LayerNorm
    x_bf16 = x_f32.astype(jnp.bfloat16)        # MXU operand

    scale = 1.0 / (float(dk) ** 0.5)

    # --- fused QKV projections: one full-width (N = head*dk / head*dv) matmul each ---
    q = (jnp.dot(x_bf16, wq_ref[...], preferred_element_type=jnp.float32) + bq_ref[...]) * scale
    k = jnp.dot(x_bf16, wk_ref[...], preferred_element_type=jnp.float32) + bk_ref[...]
    v = jnp.dot(x_bf16, wv_ref[...], preferred_element_type=jnp.float32) + bv_ref[...]

    def split_heads(t, d):
        # (M, head*d) -> (head*bt, S, d) bf16; lane slices + leading-axis stack only.
        tb = t.astype(jnp.bfloat16)
        parts = [tb[:, h * d:(h + 1) * d].reshape(bt, s, d) for h in range(head)]
        return jnp.stack(parts, axis=0).reshape(head * bt, s, d)

    q3 = split_heads(q, dk)
    k3 = split_heads(k, dk)
    v3 = split_heads(v, dv)

    # --- attention with the head axis folded into the batch dim of the einsums ---
    scores = jnp.einsum("bqd,bkd->bqk", q3, k3,
                        preferred_element_type=jnp.float32)        # (head*bt, S, S) f32

    # mask: (bt, Sm, S) bf16 with Sm in {1, S}; compare in bf16, apply once across all heads
    masked = mask_ref[...] > 0.5                                   # (bt, Sm, S) bool
    scores = jnp.where(masked[None], jnp.float32(-1e9),
                       scores.reshape(head, bt, s, s)).reshape(head * bt, s, s)

    scores = scores - jnp.max(scores, axis=-1, keepdims=True)
    p = jnp.exp(scores)
    p = p * pl.reciprocal(jnp.sum(p, axis=-1, keepdims=True), approx=True)

    z3 = jnp.einsum("bqk,bkd->bqd", p.astype(jnp.bfloat16), v3,
                    preferred_element_type=jnp.float32)            # (head*bt, S, dv)

    # merge heads back into lanes (single concat), then ONE (M, head*dv) @ (head*dv, E) projection
    z3b = z3.astype(jnp.bfloat16)
    z2 = jnp.concatenate(
        [z3b[h * bt:(h + 1) * bt].reshape(m, dv) for h in range(head)], axis=-1)
    attn = jnp.dot(z2, wz_ref[...], preferred_element_type=jnp.float32) + bz_ref[...]

    # --- Add & LayerNorm 1 ---
    out1 = _layernorm(attn + x_f32, g1_ref[...], be1_ref[...])     # (M, E) f32
    out1_b = out1.astype(jnp.bfloat16)

    # --- feed-forward, tiled over the hidden dim to bound the live (M, f_size) intermediate ---
    f_size = w1_ref.shape[1]
    n_chunks = f_size // ffn_block
    f = jnp.zeros((m, e), jnp.float32) + b2_ref[...]
    for c in range(n_chunks):                                      # static, small chunk count
        lo = c * ffn_block
        h1 = jnp.dot(out1_b, w1_ref[:, lo:lo + ffn_block],
                     preferred_element_type=jnp.float32) + b1_ref[:, lo:lo + ffn_block]
        h1 = jnp.maximum(h1, 0.0).astype(jnp.bfloat16)
        f = f + jnp.dot(h1, w2_ref[lo:lo + ffn_block, :], preferred_element_type=jnp.float32)

    # --- Add & LayerNorm 2 ---
    out = _layernorm(f + out1, g2_ref[...], be2_ref[...])
    out_ref[...] = out.astype(out_ref.dtype)


def _pick_batch_block(B, S, target_rows=512):
    """Largest divisor bt of B with bt*S <= target_rows, preferring >= 2 grid steps
    (keeps both v7x TensorCores busy and the input/output DMA pipeline alive)."""
    divisors = [d for d in range(1, B + 1) if B % d == 0]
    cands = [d for d in divisors if B // d >= 2 and d * S <= target_rows]
    if not cands:
        cands = [d for d in divisors if d * S <= target_rows] or [divisors[0]]
    return max(cands)


def _vmem_limit_bytes():
    """Generation-aware scoped-VMEM limit: ~3/4 of physical, capped at 100 MiB."""
    cap = 64 * 1024 * 1024
    try:
        info = pltpu.get_tpu_info()
        cap = int(getattr(info, "vmem_capacity_bytes", cap) or cap)
    except Exception:
        pass
    return min((cap * 3) // 4, 100 * 1024 * 1024)


def encoder_block(x, attn_mask, params, *, head, q_k_size, v_size,
                  batch_block=None, ffn_block=None):
    """x: (B, S, E) float32; attn_mask: (B, S, S) or (B, 1, S) float (1.0 = masked)."""
    B, S, E = x.shape
    assert attn_mask.shape[0] == B and attn_mask.shape[-1] == S
    Sm = attn_mask.shape[1]
    assert Sm in (1, S), "attn_mask must be (B, S, S) or (B, 1, S)"

    bt = batch_block if batch_block is not None else _pick_batch_block(B, S)
    assert B % bt == 0, "batch_block must divide batch size"

    f_size = params["w1"].shape[1]
    if ffn_block is None:
        ffn_block = f_size
        if f_size > 1024:
            for cand in (1024, 896, 768, 640, 512, 384, 256):
                if f_size % cand == 0:
                    ffn_block = cand
                    break
    assert f_size % ffn_block == 0

    # --- one-time wrapper-side layout / dtype work ---
    x2d = x.reshape(B * S, E)                      # free reshape in HBM
    mask_bf16 = attn_mask.astype(jnp.bfloat16)     # 0/1 mask, half the HBM traffic of f32

    param_args = [
        params["wq"].astype(jnp.bfloat16), params["bq"],
        params["wk"].astype(jnp.bfloat16), params["bk"],
        params["wv"].astype(jnp.bfloat16), params["bv"],
        params["wz"].astype(jnp.bfloat16), params["bz"],
        params["g1"], params["be1"],
        params["w1"].astype(jnp.bfloat16), params["b1"],
        params["w2"].astype(jnp.bfloat16), params["b2"],
        params["g2"], params["be2"],
    ]

    def _const_spec(arr):
        nd = arr.ndim
        return pl.BlockSpec(arr.shape, lambda b, nd=nd: (0,) * nd)

    in_specs = [
        pl.BlockSpec((bt * S, E), lambda b: (b, 0)),        # x slab (M, E)
        pl.BlockSpec((bt, Sm, S), lambda b: (b, 0, 0)),     # mask block
    ] + [_const_spec(p) for p in param_args]

    kernel = functools.partial(
        encoder_block_kernel,
        head=head, q_k_size=q_k_size, v_size=v_size, seq=S, ffn_block=ffn_block,
    )

    out2d = pl.pallas_call(
        kernel,
        out_shape=jax.ShapeDtypeStruct((B * S, E), x.dtype),
        grid_spec=pltpu.PrefetchScalarGridSpec(
            num_scalar_prefetch=0,
            grid=(B // bt,),
            in_specs=in_specs,
            out_specs=pl.BlockSpec((bt * S, E), lambda b: (b, 0)),
        ),
        compiler_params=pltpu.CompilerParams(
            dimension_semantics=("parallel",),
            vmem_limit_bytes=_vmem_limit_bytes(),
        ),
    )(x2d, mask_bf16, *param_args)

    return out2d.reshape(B, S, E)


def encoder_block_reference(x, attn_mask, params, *, head, q_k_size, v_size):
    """Pure-JAX f32 reference mirroring the PyTorch forward."""
    B, S, E = x.shape
    q = x @ params["wq"] + params["bq"]
    k = x @ params["wk"] + params["bk"]
    v = x @ params["wv"] + params["bv"]
    q = q.reshape(B, S, head, q_k_size).transpose(0, 2, 1, 3)
    k = k.reshape(B, S, head, q_k_size).transpose(0, 2, 1, 3)
    v = v.reshape(B, S, head, v_size).transpose(0, 2, 1, 3)
    scores = jnp.einsum("bhqd,bhkd->bhqk", q, k) / (float(q_k_size) ** 0.5)
    scores = jnp.where(attn_mask[:, None, :, :] > 0.5, -1e9, scores)
    attn = jax.nn.softmax(scores, axis=-1)
    z = jnp.einsum("bhqk,bhkd->bhqd", attn, v)
    z = z.transpose(0, 2, 1, 3).reshape(B, S, head * v_size)
    z = z @ params["wz"] + params["bz"]
    out1 = _layernorm(z + x, params["g1"], params["be1"])
    f = jnp.maximum(out1 @ params["w1"] + params["b1"], 0.0)
    f = f @ params["w2"] + params["b2"]
    return _layernorm(f + out1, params["g2"], params["be2"])


def init_params(key, emb_size, q_k_size, v_size, f_size, head):
    ks = jax.random.split(key, 8)
    s = 0.1

    def lin(k, fan_in, fan_out):
        kw, kb = jax.random.split(k)
        w = s * jax.random.normal(kw, (fan_in, fan_out), jnp.float32)
        b = s * jax.random.normal(kb, (1, fan_out), jnp.float32)
        return w, b

    wq, bq = lin(ks[0], emb_size, head * q_k_size)
    wk, bk = lin(ks[1], emb_size, head * q_k_size)
    wv, bv = lin(ks[2], emb_size, head * v_size)
    wz, bz = lin(ks[3], head * v_size, emb_size)
    w1, b1 = lin(ks[4], emb_size, f_size)
    w2, b2 = lin(ks[5], f_size, emb_size)
    return {
        "wq": wq, "bq": bq, "wk": wk, "bk": bk, "wv": wv, "bv": bv,
        "wz": wz, "bz": bz,
        "g1": jnp.ones((1, emb_size), jnp.float32),
        "be1": jnp.zeros((1, emb_size), jnp.float32),
        "w1": w1, "b1": b1, "w2": w2, "b2": b2,
        "g2": jnp.ones((1, emb_size), jnp.float32),
        "be2": jnp.zeros((1, emb_size), jnp.float32),
    }


if __name__ == "__main__":
    # Small shapes consistent with the module: batch=2, seq=8, emb=32, head=4, dk=dv=16, ffn=64.
    B, S = 2, 8
    emb_size, q_k_size, v_size, f_size, head = 32, 16, 16, 64, 4

    key = jax.random.PRNGKey(0)
    kx, kp, km = jax.random.split(key, 3)

    x = jax.random.normal(kx, (B, S, emb_size), jnp.float32)
    params = init_params(kp, emb_size, q_k_size, v_size, f_size, head)

    # 1) key-padding mask: last two key positions masked, shipped as (B, 1, S)
    key_pad = (jnp.arange(S) >= S - 2).astype(jnp.float32)
    pad_mask = jnp.broadcast_to(key_pad[None, None, :], (B, 1, S))

    out = encoder_block(x, pad_mask, params, head=head, q_k_size=q_k_size, v_size=v_size)
    out = jax.block_until_ready(out)
    ref = encoder_block_reference(x, pad_mask, params, head=head,
                                  q_k_size=q_k_size, v_size=v_size)
    assert out.shape == (B, S, emb_size)
    # Tolerance loosened vs the f32 reference: bf16 MXU operands (f32 accumulation) and an
    # approximate (EUP) reciprocal in the softmax normalization.
    assert jnp.allclose(out, ref, atol=5e-2, rtol=5e-2), "Pallas mismatch (padding mask)"

    # 2) general (B, S, S) mask path
    full_mask = (jax.random.uniform(km, (B, S, S)) < 0.25).astype(jnp.float32)
    out2 = jax.block_until_ready(
        encoder_block(x, full_mask, params, head=head, q_k_size=q_k_size, v_size=v_size))
    ref2 = encoder_block_reference(x, full_mask, params, head=head,
                                   q_k_size=q_k_size, v_size=v_size)
    assert jnp.allclose(out2, ref2, atol=5e-2, rtol=5e-2), "Pallas mismatch (full mask)"

    print("KERNEL_OK")
</pallas_src>

<mosaic_0001>
module attributes {stable_mosaic.version = 11 : i64} {
  func.func @encoder_block_kernel(%arg0: i32, %arg1: memref<8x32xf32, #tpu.memory_space<vmem>>, %arg2: memref<1x1x8xbf16, #tpu.memory_space<vmem>>, %arg3: memref<32x64xbf16, #tpu.memory_space<vmem>>, %arg4: memref<1x64xf32, #tpu.memory_space<vmem>>, %arg5: memref<32x64xbf16, #tpu.memory_space<vmem>>, %arg6: memref<1x64xf32, #tpu.memory_space<vmem>>, %arg7: memref<32x64xbf16, #tpu.memory_space<vmem>>, %arg8: memref<1x64xf32, #tpu.memory_space<vmem>>, %arg9: memref<64x32xbf16, #tpu.memory_space<vmem>>, %arg10: memref<1x32xf32, #tpu.memory_space<vmem>>, %arg11: memref<1x32xf32, #tpu.memory_space<vmem>>, %arg12: memref<1x32xf32, #tpu.memory_space<vmem>>, %arg13: memref<32x64xbf16, #tpu.memory_space<vmem>>, %arg14: memref<1x64xf32, #tpu.memory_space<vmem>>, %arg15: memref<64x32xbf16, #tpu.memory_space<vmem>>, %arg16: memref<1x32xf32, #tpu.memory_space<vmem>>, %arg17: memref<1x32xf32, #tpu.memory_space<vmem>>, %arg18: memref<1x32xf32, #tpu.memory_space<vmem>>, %arg19: memref<8x32xf32, #tpu.memory_space<vmem>>) attributes {dimension_semantics = [#tpu.dimension_semantics<parallel>], iteration_bounds = array<i64: 2>, scalar_prefetch = 0 : i64, scratch_operands = 0 : i64, tpu.core_type = #tpu.core_type<tc>, window_params = [{transform_indices = @transform_0, window_bounds = array<i64: 8, 32>}, {transform_indices = @transform_1, window_bounds = array<i64: 1, 1, 8>}, {pipeline_mode = #tpu.pipeline_mode<synchronous>, transform_indices = @transform_2, window_bounds = array<i64: 32, 64>}, {pipeline_mode = #tpu.pipeline_mode<synchronous>, transform_indices = @transform_3, window_bounds = array<i64: 1, 64>}, {pipeline_mode = #tpu.pipeline_mode<synchronous>, transform_indices = @transform_4, window_bounds = array<i64: 32, 64>}, {pipeline_mode = #tpu.pipeline_mode<synchronous>, transform_indices = @transform_5, window_bounds = array<i64: 1, 64>}, {pipeline_mode = #tpu.pipeline_mode<synchronous>, transform_indices = @transform_6, window_bounds = array<i64: 32, 64>}, {pipeline_mode = #tpu.pipeline_mode<synchronous>, transform_indices = @transform_7, window_bounds = array<i64: 1, 64>}, {pipeline_mode = #tpu.pipeline_mode<synchronous>, transform_indices = @transform_8, window_bounds = array<i64: 64, 32>}, {pipeline_mode = #tpu.pipeline_mode<synchronous>, transform_indices = @transform_9, window_bounds = array<i64: 1, 32>}, {pipeline_mode = #tpu.pipeline_mode<synchronous>, transform_indices = @transform_10, window_bounds = array<i64: 1, 32>}, {pipeline_mode = #tpu.pipeline_mode<synchronous>, transform_indices = @transform_11, window_bounds = array<i64: 1, 32>}, {pipeline_mode = #tpu.pipeline_mode<synchronous>, transform_indices = @transform_12, window_bounds = array<i64: 32, 64>}, {pipeline_mode = #tpu.pipeline_mode<synchronous>, transform_indices = @transform_13, window_bounds = array<i64: 1, 64>}, {pipeline_mode = #tpu.pipeline_mode<synchronous>, transform_indices = @transform_14, window_bounds = array<i64: 64, 32>}, {pipeline_mode = #tpu.pipeline_mode<synchronous>, transform_indices = @transform_15, window_bounds = array<i64: 1, 32>}, {pipeline_mode = #tpu.pipeline_mode<synchronous>, transform_indices = @transform_16, window_bounds = array<i64: 1, 32>}, {pipeline_mode = #tpu.pipeline_mode<synchronous>, transform_indices = @transform_17, window_bounds = array<i64: 1, 32>}, {transform_indices = @transform_18, window_bounds = array<i64: 8, 32>}]} {
    %c0 = arith.constant 0 : index
    %c0_0 = arith.constant 0 : index
    %0 = vector.load %arg1[%c0, %c0_0] : memref<8x32xf32, #tpu.memory_space<vmem>>, vector<8x32xf32>
    %1 = arith.truncf %0 : vector<8x32xf32> to vector<8x32xbf16>
    %c0_1 = arith.constant 0 : index
    %c0_2 = arith.constant 0 : index
    %2 = vector.load %arg3[%c0_1, %c0_2] : memref<32x64xbf16, #tpu.memory_space<vmem>>, vector<32x64xbf16>
    %cst = arith.constant dense<0.000000e+00> : vector<8x64xf32>
    %3 = tpu.matmul %1, %2, %cst {dimension_numbers = #tpu.dot_dimension_numbers<[1], [0], [0], [1], [0, 0, 1, 1], [], []>} : vector<8x32xbf16>, vector<32x64xbf16>, vector<8x64xf32> -> vector<8x64xf32>
    %c0_3 = arith.constant 0 : index
    %c0_4 = arith.constant 0 : index
    %4 = vector.load %arg4[%c0_3, %c0_4] : memref<1x64xf32, #tpu.memory_space<vmem>>, vector<1x64xf32>
    %5 = vector.broadcast %4 : vector<1x64xf32> to vector<8x64xf32>
    %6 = arith.addf %3, %5 : vector<8x64xf32>
    %cst_5 = arith.constant 2.500000e-01 : f32
    %7 = vector.broadcast %cst_5 : f32 to vector<8x64xf32>
    %8 = arith.mulf %6, %7 : vector<8x64xf32>
    %c0_6 = arith.constant 0 : index
    %c0_7 = arith.constant 0 : index
    %9 = vector.load %arg5[%c0_6, %c0_7] : memref<32x64xbf16, #tpu.memory_space<vmem>>, vector<32x64xbf16>
    %cst_8 = arith.constant dense<0.000000e+00> : vector<8x64xf32>
    %10 = tpu.matmul %1, %9, %cst_8 {dimension_numbers = #tpu.dot_dimension_numbers<[1], [0], [0], [1], [0, 0, 1, 1], [], []>} : vector<8x32xbf16>, vector<32x64xbf16>, vector<8x64xf32> -> vector<8x64xf32>
    %c0_9 = arith.constant 0 : index
    %c0_10 = arith.constant 0 : index
    %11 = vector.load %arg6[%c0_9, %c0_10] : memref<1x64xf32, #tpu.memory_space<vmem>>, vector<1x64xf32>
    %12 = vector.broadcast %11 : vector<1x64xf32> to vector<8x64xf32>
    %13 = arith.addf %10, %12 : vector<8x64xf32>
    %c0_11 = arith.constant 0 : index
    %c0_12 = arith.constant 0 : index
    %14 = vector.load %arg7[%c0_11, %c0_12] : memref<32x64xbf16, #tpu.memory_space<vmem>>, vector<32x64xbf16>
    %cst_13 = arith.constant dense<0.000000e+00> : vector<8x64xf32>
    %15 = tpu.matmul %1, %14, %cst_13 {dimension_numbers = #tpu.dot_dimension_numbers<[1], [0], [0], [1], [0, 0, 1, 1], [], []>} : vector<8x32xbf16>, vector<32x64xbf16>, vector<8x64xf32> -> vector<8x64xf32>
    %c0_14 = arith.constant 0 : index
    %c0_15 = arith.constant 0 : index
    %16 = vector.load %arg8[%c0_14, %c0_15] : memref<1x64xf32, #tpu.memory_space<vmem>>, vector<1x64xf32>
    %17 = vector.broadcast %16 : vector<1x64xf32> to vector<8x64xf32>
    %18 = arith.addf %15, %17 : vector<8x64xf32>
    %19 = arith.truncf %8 : vector<8x64xf32> to vector<8x64xbf16>
    %20 = vector.extract_strided_slice %19 {offsets = [0, 0], sizes = [8, 16], strides = [1, 1]} : vector<8x64xbf16> to vector<8x16xbf16>
    %21 = vector.shape_cast %20 : vector<8x16xbf16> to vector<1x8x16xbf16>
    %22 = vector.extract_strided_slice %19 {offsets = [0, 16], sizes = [8, 16], strides = [1, 1]} : vector<8x64xbf16> to vector<8x16xbf16>
    %23 = vector.shape_cast %22 : vector<8x16xbf16> to vector<1x8x16xbf16>
    %24 = vector.extract_strided_slice %19 {offsets = [0, 32], sizes = [8, 16], strides = [1, 1]} : vector<8x64xbf16> to vector<8x16xbf16>
    %25 = vector.shape_cast %24 : vector<8x16xbf16> to vector<1x8x16xbf16>
    %26 = vector.extract_strided_slice %19 {offsets = [0, 48], sizes = [8, 16], strides = [1, 1]} : vector<8x64xbf16> to vector<8x16xbf16>
    %27 = vector.shape_cast %26 : vector<8x16xbf16> to vector<1x8x16xbf16>
    %28 = vector.shape_cast %21 : vector<1x8x16xbf16> to vector<1x1x8x16xbf16>
    %29 = vector.shape_cast %23 : vector<1x8x16xbf16> to vector<1x1x8x16xbf16>
    %30 = vector.shape_cast %25 : vector<1x8x16xbf16> to vector<1x1x8x16xbf16>
    %31 = vector.shape_cast %27 : vector<1x8x16xbf16> to vector<1x1x8x16xbf16>
    %32 = tpu.concatenate %28, %29, %30, %31 in 0 : vector<1x1x8x16xbf16>, vector<1x1x8x16xbf16>, vector<1x1x8x16xbf16>, vector<1x1x8x16xbf16> -> vector<4x1x8x16xbf16>
    %33 = vector.shape_cast %32 : vector<4x1x8x16xbf16> to vector<4x8x16xbf16>
    %34 = arith.truncf %13 : vector<8x64xf32> to vector<8x64xbf16>
    %35 = vector.extract_strided_slice %34 {offsets = [0, 0], sizes = [8, 16], strides = [1, 1]} : vector<8x64xbf16> to vector<8x16xbf16>
    %36 = vector.shape_cast %35 : vector<8x16xbf16> to vector<1x8x16xbf16>
    %37 = vector.extract_strided_slice %34 {offsets = [0, 16], sizes = [8, 16], strides = [1, 1]} : vector<8x64xbf16> to vector<8x16xbf16>
    %38 = vector.shape_cast %37 : vector<8x16xbf16> to vector<1x8x16xbf16>
    %39 = vector.extract_strided_slice %34 {offsets = [0, 32], sizes = [8, 16], strides = [1, 1]} : vector<8x64xbf16> to vector<8x16xbf16>
    %40 = vector.shape_cast %39 : vector<8x16xbf16> to vector<1x8x16xbf16>
    %41 = vector.extract_strided_slice %34 {offsets = [0, 48], sizes = [8, 16], strides = [1, 1]} : vector<8x64xbf16> to vector<8x16xbf16>
    %42 = vector.shape_cast %41 : vector<8x16xbf16> to vector<1x8x16xbf16>
    %43 = vector.shape_cast %36 : vector<1x8x16xbf16> to vector<1x1x8x16xbf16>
    %44 = vector.shape_cast %38 : vector<1x8x16xbf16> to vector<1x1x8x16xbf16>
    %45 = vector.shape_cast %40 : vector<1x8x16xbf16> to vector<1x1x8x16xbf16>
    %46 = vector.shape_cast %42 : vector<1x8x16xbf16> to vector<1x1x8x16xbf16>
    %47 = tpu.concatenate %43, %44, %45, %46 in 0 : vector<1x1x8x16xbf16>, vector<1x1x8x16xbf16>, vector<1x1x8x16xbf16>, vector<1x1x8x16xbf16> -> vector<4x1x8x16xbf16>
    %48 = vector.shape_cast %47 : vector<4x1x8x16xbf16> to vector<4x8x16xbf16>
    %49 = arith.truncf %18 : vector<8x64xf32> to vector<8x64xbf16>
    %50 = vector.extract_strided_slice %49 {offsets = [0, 0], sizes = [8, 16], strides = [1, 1]} : vector<8x64xbf16> to vector<8x16xbf16>
    %51 = vector.shape_cast %50 : vector<8x16xbf16> to vector<1x8x16xbf16>
    %52 = vector.extract_strided_slice %49 {offsets = [0, 16], sizes = [8, 16], strides = [1, 1]} : vector<8x64xbf16> to vector<8x16xbf16>
    %53 = vector.shape_cast %52 : vector<8x16xbf16> to vector<1x8x16xbf16>
    %54 = vector.extract_strided_slice %49 {offsets = [0, 32], sizes = [8, 16], strides = [1, 1]} : vector<8x64xbf16> to vector<8x16xbf16>
    %55 = vector.shape_cast %54 : vector<8x16xbf16> to vector<1x8x16xbf16>
    %56 = vector.extract_strided_slice %49 {offsets = [0, 48], sizes = [8, 16], strides = [1, 1]} : vector<8x64xbf16> to vector<8x16xbf16>
    %57 = vector.shape_cast %56 : vector<8x16xbf16> to vector<1x8x16xbf16>
    %58 = vector.shape_cast %51 : vector<1x8x16xbf16> to vector<1x1x8x16xbf16>
    %59 = vector.shape_cast %53 : vector<1x8x16xbf16> to vector<1x1x8x16xbf16>
    %60 = vector.shape_cast %55 : vector<1x8x16xbf16> to vector<1x1x8x16xbf16>
    %61 = vector.shape_cast %57 : vector<1x8x16xbf16> to vector<1x1x8x16xbf16>
    %62 = tpu.concatenate %58, %59, %60, %61 in 0 : vector<1x1x8x16xbf16>, vector<1x1x8x16xbf16>, vector<1x1x8x16xbf16>, vector<1x1x8x16xbf16> -> vector<4x1x8x16xbf16>
    %63 = vector.shape_cast %62 : vector<4x1x8x16xbf16> to vector<4x8x16xbf16>
    "tpu.trace_start"() <{level = 10 : i32, message = "bqd,bkd->bqk"}> : () -> ()
    %cst_16 = arith.constant dense<0.000000e+00> : vector<4x8x8xf32>
    %64 = tpu.matmul %33, %48, %cst_16 {dimension_numbers = #tpu.dot_dimension_numbers<[2], [2], [1], [1], [0, 0, 0, 1, 1, 1], [0], [0]>} : vector<4x8x16xbf16>, vector<4x8x16xbf16>, vector<4x8x8xf32> -> vector<4x8x8xf32>
    "tpu.trace_stop"() : () -> ()
    %c0_17 = arith.constant 0 : index
    %c0_18 = arith.constant 0 : index
    %c0_19 = arith.constant 0 : index
    %65 = vector.load %arg2[%c0_17, %c0_18, %c0_19] : memref<1x1x8xbf16, #tpu.memory_space<vmem>>, vector<1x1x8xbf16>
    %cst_20 = arith.constant 5.000000e-01 : bf16
    %66 = vector.broadcast %cst_20 : bf16 to vector<1x1x8xbf16>
    %67 = arith.cmpf ogt, %65, %66 : vector<1x1x8xbf16>
    %68 = vector.shape_cast %67 : vector<1x1x8xi1> to vector<1x1x1x8xi1>
    %69 = vector.shape_cast %64 : vector<4x8x8xf32> to vector<4x1x8x8xf32>
    %cst_21 = arith.constant -1.000000e+09 : f32
    %70 = vector.shape_cast %68 : vector<1x1x1x8xi1> to vector<1x1x1x8xi1>
    %71 = vector.broadcast %70 : vector<1x1x1x8xi1> to vector<4x1x8x8xi1>
    %72 = vector.broadcast %cst_21 : f32 to vector<4x1x8x8xf32>
    %73 = arith.select %71, %72, %69 : vector<4x1x8x8xi1>, vector<4x1x8x8xf32>
    %74 = vector.shape_cast %73 : vector<4x1x8x8xf32> to vector<4x8x8xf32>
    %cst_22 = arith.constant dense<0xFF800000> : vector<4x8xf32>
    %75 = vector.multi_reduction <maximumf>, %74, %cst_22 [2] : vector<4x8x8xf32> to vector<4x8xf32>
    %76 = vector.shape_cast %75 : vector<4x8xf32> to vector<4x8x1xf32>
    %77 = vector.broadcast %76 : vector<4x8x1xf32> to vector<4x8x8xf32>
    %78 = arith.subf %74, %77 : vector<4x8x8xf32>
    %79 = math.exp %78 : vector<4x8x8xf32>
    %cst_23 = arith.constant dense<0.000000e+00> : vector<4x8xf32>
    %80 = vector.multi_reduction <add>, %79, %cst_23 [2] : vector<4x8x8xf32> to vector<4x8xf32>
    %81 = vector.shape_cast %80 : vector<4x8xf32> to vector<4x8x1xf32>
    %82 = tpu.reciprocal %81 {approx = true} : vector<4x8x1xf32> -> vector<4x8x1xf32>
    %83 = vector.broadcast %82 : vector<4x8x1xf32> to vector<4x8x8xf32>
    %84 = arith.mulf %79, %83 : vector<4x8x8xf32>
    %85 = arith.truncf %84 : vector<4x8x8xf32> to vector<4x8x8xbf16>
    "tpu.trace_start"() <{level = 10 : i32, message = "bqk,bkd->bqd"}> : () -> ()
    %cst_24 = arith.constant dense<0.000000e+00> : vector<4x8x16xf32>
    %86 = tpu.matmul %85, %63, %cst_24 {dimension_numbers = #tpu.dot_dimension_numbers<[2], [1], [1], [2], [0, 0, 0, 1, 1, 2], [0], [0]>} : vector<4x8x8xbf16>, vector<4x8x16xbf16>, vector<4x8x16xf32> -> vector<4x8x16xf32>
    "tpu.trace_stop"() : () -> ()
    %87 = arith.truncf %86 : vector<4x8x16xf32> to vector<4x8x16xbf16>
    %88 = vector.extract_strided_slice %87 {offsets = [0, 0, 0], sizes = [1, 8, 16], strides = [1, 1, 1]} : vector<4x8x16xbf16> to vector<1x8x16xbf16>
    %89 = vector.shape_cast %88 : vector<1x8x16xbf16> to vector<8x16xbf16>
    %90 = vector.extract_strided_slice %87 {offsets = [1, 0, 0], sizes = [1, 8, 16], strides = [1, 1, 1]} : vector<4x8x16xbf16> to vector<1x8x16xbf16>
    %91 = vector.shape_cast %90 : vector<1x8x16xbf16> to vector<8x16xbf16>
    %92 = vector.extract_strided_slice %87 {offsets = [2, 0, 0], sizes = [1, 8, 16], strides = [1, 1, 1]} : vector<4x8x16xbf16> to vector<1x8x16xbf16>
    %93 = vector.shape_cast %92 : vector<1x8x16xbf16> to vector<8x16xbf16>
    %94 = vector.extract_strided_slice %87 {offsets = [3, 0, 0], sizes = [1, 8, 16], strides = [1, 1, 1]} : vector<4x8x16xbf16> to vector<1x8x16xbf16>
    %95 = vector.shape_cast %94 : vector<1x8x16xbf16> to vector<8x16xbf16>
    %96 = tpu.concatenate %89, %91, %93, %95 in 1 : vector<8x16xbf16>, vector<8x16xbf16>, vector<8x16xbf16>, vector<8x16xbf16> -> vector<8x64xbf16>
    %c0_25 = arith.constant 0 : index
    %c0_26 = arith.constant 0 : index
    %97 = vector.load %arg9[%c0_25, %c0_26] : memref<64x32xbf16, #tpu.memory_space<vmem>>, vector<64x32xbf16>
    %cst_27 = arith.constant dense<0.000000e+00> : vector<8x32xf32>
    %98 = tpu.matmul %96, %97, %cst_27 {dimension_numbers = #tpu.dot_dimension_numbers<[1], [0], [0], [1], [0, 0, 1, 1], [], []>} : vector<8x64xbf16>, vector<64x32xbf16>, vector<8x32xf32> -> vector<8x32xf32>
    %c0_28 = arith.constant 0 : index
    %c0_29 = arith.constant 0 : index
    %99 = vector.load %arg10[%c0_28, %c0_29] : memref<1x32xf32, #tpu.memory_space<vmem>>, vector<1x32xf32>
    %100 = vector.broadcast %99 : vector<1x32xf32> to vector<8x32xf32>
    %101 = arith.addf %98, %100 : vector<8x32xf32>
    %102 = arith.addf %101, %0 : vector<8x32xf32>
    %c0_30 = arith.constant 0 : index
    %c0_31 = arith.constant 0 : index
    %103 = vector.load %arg11[%c0_30, %c0_31] : memref<1x32xf32, #tpu.memory_space<vmem>>, vector<1x32xf32>
    %c0_32 = arith.constant 0 : index
    %c0_33 = arith.constant 0 : index
    %104 = vector.load %arg12[%c0_32, %c0_33] : memref<1x32xf32, #tpu.memory_space<vmem>>, vector<1x32xf32>
    %cst_34 = arith.constant dense<0.000000e+00> : vector<8xf32>
    %105 = vector.multi_reduction <add>, %102, %cst_34 [1] : vector<8x32xf32> to vector<8xf32>
    %106 = vector.shape_cast %105 : vector<8xf32> to vector<8x1xf32>
    %cst_35 = arith.constant 3.200000e+01 : f32
    %107 = vector.broadcast %cst_35 : f32 to vector<8x1xf32>
    %108 = arith.divf %106, %107 : vector<8x1xf32>
    %109 = vector.broadcast %108 : vector<8x1xf32> to vector<8x32xf32>
    %110 = arith.subf %102, %109 : vector<8x32xf32>
    %111 = arith.mulf %110, %110 : vector<8x32xf32>
    %cst_36 = arith.constant dense<0.000000e+00> : vector<8xf32>
    %112 = vector.multi_reduction <add>, %111, %cst_36 [1] : vector<8x32xf32> to vector<8xf32>
    %113 = vector.shape_cast %112 : vector<8xf32> to vector<8x1xf32>
    %cst_37 = arith.constant 3.200000e+01 : f32
    %114 = vector.broadcast %cst_37 : f32 to vector<8x1xf32>
    %115 = arith.divf %113, %114 : vector<8x1xf32>
    %116 = vector.broadcast %108 : vector<8x1xf32> to vector<8x32xf32>
    %117 = arith.subf %102, %116 : vector<8x32xf32>
    %cst_38 = arith.constant 9.99999974E-6 : f32
    %118 = vector.broadcast %cst_38 : f32 to vector<8x1xf32>
    %119 = arith.addf %115, %118 : vector<8x1xf32>
    %120 = math.rsqrt %119 : vector<8x1xf32>
    %121 = vector.broadcast %120 : vector<8x1xf32> to vector<8x32xf32>
    %122 = arith.mulf %117, %121 : vector<8x32xf32>
    %123 = vector.broadcast %103 : vector<1x32xf32> to vector<8x32xf32>
    %124 = arith.mulf %122, %123 : vector<8x32xf32>
    %125 = vector.broadcast %104 : vector<1x32xf32> to vector<8x32xf32>
    %126 = arith.addf %124, %125 : vector<8x32xf32>
    %127 = arith.truncf %126 : vector<8x32xf32> to vector<8x32xbf16>
    %cst_39 = arith.constant 0.000000e+00 : f32
    %128 = vector.broadcast %cst_39 : f32 to vector<8x32xf32>
    %c0_40 = arith.constant 0 : index
    %c0_41 = arith.constant 0 : index
    %129 = vector.load %arg16[%c0_40, %c0_41] : memref<1x32xf32, #tpu.memory_space<vmem>>, vector<1x32xf32>
    %130 = vector.broadcast %129 : vector<1x32xf32> to vector<8x32xf32>
    %131 = arith.addf %128, %130 : vector<8x32xf32>
    %c0_42 = arith.constant 0 : index
    %c0_43 = arith.constant 0 : index
    %132 = vector.load %arg13[%c0_42, %c0_43] : memref<32x64xbf16, #tpu.memory_space<vmem>>, vector<32x64xbf16>
    %cst_44 = arith.constant dense<0.000000e+00> : vector<8x64xf32>
    %133 = tpu.matmul %127, %132, %cst_44 {dimension_numbers = #tpu.dot_dimension_numbers<[1], [0], [0], [1], [0, 0, 1, 1], [], []>} : vector<8x32xbf16>, vector<32x64xbf16>, vector<8x64xf32> -> vector<8x64xf32>
    %c0_45 = arith.constant 0 : index
    %c0_46 = arith.constant 0 : index
    %134 = vector.load %arg14[%c0_45, %c0_46] : memref<1x64xf32, #tpu.memory_space<vmem>>, vector<1x64xf32>
    %135 = vector.broadcast %134 : vector<1x64xf32> to vector<8x64xf32>
    %136 = arith.addf %133, %135 : vector<8x64xf32>
    %cst_47 = arith.constant 0.000000e+00 : f32
    %137 = vector.broadcast %cst_47 : f32 to vector<8x64xf32>
    %138 = arith.maximumf %136, %137 : vector<8x64xf32>
    %139 = arith.truncf %138 : vector<8x64xf32> to vector<8x64xbf16>
    %c0_48 = arith.constant 0 : index
    %c0_49 = arith.constant 0 : index
    %140 = vector.load %arg15[%c0_48, %c0_49] : memref<64x32xbf16, #tpu.memory_space<vmem>>, vector<64x32xbf16>
    %cst_50 = arith.constant dense<0.000000e+00> : vector<8x32xf32>
    %141 = tpu.matmul %139, %140, %cst_50 {dimension_numbers = #tpu.dot_dimension_numbers<[1], [0], [0], [1], [0, 0, 1, 1], [], []>} : vector<8x64xbf16>, vector<64x32xbf16>, vector<8x32xf32> -> vector<8x32xf32>
    %142 = arith.addf %131, %141 : vector<8x32xf32>
    %143 = arith.addf %142, %126 : vector<8x32xf32>
    %c0_51 = arith.constant 0 : index
    %c0_52 = arith.constant 0 : index
    %144 = vector.load %arg17[%c0_51, %c0_52] : memref<1x32xf32, #tpu.memory_space<vmem>>, vector<1x32xf32>
    %c0_53 = arith.constant 0 : index
    %c0_54 = arith.constant 0 : index
    %145 = vector.load %arg18[%c0_53, %c0_54] : memref<1x32xf32, #tpu.memory_space<vmem>>, vector<1x32xf32>
    %cst_55 = arith.constant dense<0.000000e+00> : vector<8xf32>
    %146 = vector.multi_reduction <add>, %143, %cst_55 [1] : vector<8x32xf32> to vector<8xf32>
    %147 = vector.shape_cast %146 : vector<8xf32> to vector<8x1xf32>
    %cst_56 = arith.constant 3.200000e+01 : f32
    %148 = vector.broadcast %cst_56 : f32 to vector<8x1xf32>
    %149 = arith.divf %147, %148 : vector<8x1xf32>
    %150 = vector.broadcast %149 : vector<8x1xf32> to vector<8x32xf32>
    %151 = arith.subf %143, %150 : vector<8x32xf32>
    %152 = arith.mulf %151, %151 : vector<8x32xf32>
    %cst_57 = arith.constant dense<0.000000e+00> : vector<8xf32>
    %153 = vector.multi_reduction <add>, %152, %cst_57 [1] : vector<8x32xf32> to vector<8xf32>
    %154 = vector.shape_cast %153 : vector<8xf32> to vector<8x1xf32>
    %cst_58 = arith.constant 3.200000e+01 : f32
    %155 = vector.broadcast %cst_58 : f32 to vector<8x1xf32>
    %156 = arith.divf %154, %155 : vector<8x1xf32>
    %157 = vector.broadcast %149 : vector<8x1xf32> to vector<8x32xf32>
    %158 = arith.subf %143, %157 : vector<8x32xf32>
    %cst_59 = arith.constant 9.99999974E-6 : f32
    %159 = vector.broadcast %cst_59 : f32 to vector<8x1xf32>
    %160 = arith.addf %156, %159 : vector<8x1xf32>
    %161 = math.rsqrt %160 : vector<8x1xf32>
    %162 = vector.broadcast %161 : vector<8x1xf32> to vector<8x32xf32>
    %163 = arith.mulf %158, %162 : vector<8x32xf32>
    %164 = vector.broadcast %144 : vector<1x32xf32> to vector<8x32xf32>
    %165 = arith.mulf %163, %164 : vector<8x32xf32>
    %166 = vector.broadcast %145 : vector<1x32xf32> to vector<8x32xf32>
    %167 = arith.addf %165, %166 : vector<8x32xf32>
    %c0_60 = arith.constant 0 : index
    %c0_61 = arith.constant 0 : index
    %168 = vector.load %arg19[%c0_60, %c0_61] : memref<8x32xf32, #tpu.memory_space<vmem>>, vector<8x32xf32>
    tpu.vector_store %arg19[%c0_60, %c0_61], %167 {strides = array<i32>} : memref<8x32xf32, #tpu.memory_space<vmem>>, vector<8x32xf32>,
    return
  }
  func.func @transform_0(%arg0: i32) -> (i32, i32) {
    %c0_i32 = arith.constant 0 : i32
    %c0_i32_0 = arith.constant 0 : i32
    return %arg0, %c0_i32 : i32, i32
  }
  func.func @transform_1(%arg0: i32) -> (i32, i32, i32) {
    %c0_i32 = arith.constant 0 : i32
    %c0_i32_0 = arith.constant 0 : i32
    %c0_i32_1 = arith.constant 0 : i32
    return %arg0, %c0_i32, %c0_i32_0 : i32, i32, i32
  }
  func.func @transform_2(%arg0: i32) -> (i32, i32) {
    %c0_i32 = arith.constant 0 : i32
    %c0_i32_0 = arith.constant 0 : i32
    %c0_i32_1 = arith.constant 0 : i32
    return %c0_i32, %c0_i32_0 : i32, i32
  }
  func.func @transform_3(%arg0: i32) -> (i32, i32) {
    %c0_i32 = arith.constant 0 : i32
    %c0_i32_0 = arith.constant 0 : i32
    %c0_i32_1 = arith.constant 0 : i32
    return %c0_i32, %c0_i32_0 : i32, i32
  }
  func.func @transform_4(%arg0: i32) -> (i32, i32) {
    %c0_i32 = arith.constant 0 : i32
    %c0_i32_0 = arith.constant 0 : i32
    %c0_i32_1 = arith.constant 0 : i32
    return %c0_i32, %c0_i32_0 : i32, i32
  }
  func.func @transform_5(%arg0: i32) -> (i32, i32) {
    %c0_i32 = arith.constant 0 : i32
    %c0_i32_0 = arith.constant 0 : i32
    %c0_i32_1 = arith.constant 0 : i32
    return %c0_i32, %c0_i32_0 : i32, i32
  }
  func.func @transform_6(%arg0: i32) -> (i32, i32) {
    %c0_i32 = arith.constant 0 : i32
    %c0_i32_0 = arith.constant 0 : i32
    %c0_i32_1 = arith.constant 0 : i32
    return %c0_i32, %c0_i32_0 : i32, i32
  }
  func.func @transform_7(%arg0: i32) -> (i32, i32) {
    %c0_i32 = arith.constant 0 : i32
    %c0_i32_0 = arith.constant 0 : i32
    %c0_i32_1 = arith.constant 0 : i32
    return %c0_i32, %c0_i32_0 : i32, i32
  }
  func.func @transform_8(%arg0: i32) -> (i32, i32) {
    %c0_i32 = arith.constant 0 : i32
    %c0_i32_0 = arith.constant 0 : i32
    %c0_i32_1 = arith.constant 0 : i32
    return %c0_i32, %c0_i32_0 : i32, i32
  }
  func.func @transform_9(%arg0: i32) -> (i32, i32) {
    %c0_i32 = arith.constant 0 : i32
    %c0_i32_0 = arith.constant 0 : i32
    %c0_i32_1 = arith.constant 0 : i32
    return %c0_i32, %c0_i32_0 : i32, i32
  }
  func.func @transform_10(%arg0: i32) -> (i32, i32) {
    %c0_i32 = arith.constant 0 : i32
    %c0_i32_0 = arith.constant 0 : i32
    %c0_i32_1 = arith.constant 0 : i32
    return %c0_i32, %c0_i32_0 : i32, i32
  }
  func.func @transform_11(%arg0: i32) -> (i32, i32) {
    %c0_i32 = arith.constant 0 : i32
    %c0_i32_0 = arith.constant 0 : i32
    %c0_i32_1 = arith.constant 0 : i32
    return %c0_i32, %c0_i32_0 : i32, i32
  }
  func.func @transform_12(%arg0: i32) -> (i32, i32) {
    %c0_i32 = arith.constant 0 : i32
    %c0_i32_0 = arith.constant 0 : i32
    %c0_i32_1 = arith.constant 0 : i32
    return %c0_i32, %c0_i32_0 : i32, i32
  }
  func.func @transform_13(%arg0: i32) -> (i32, i32) {
    %c0_i32 = arith.constant 0 : i32
    %c0_i32_0 = arith.constant 0 : i32
    %c0_i32_1 = arith.constant 0 : i32
    return %c0_i32, %c0_i32_0 : i32, i32
  }
  func.func @transform_14(%arg0: i32) -> (i32, i32) {
    %c0_i32 = arith.constant 0 : i32
    %c0_i32_0 = arith.constant 0 : i32
    %c0_i32_1 = arith.constant 0 : i32
    return %c0_i32, %c0_i32_0 : i32, i32
  }
  func.func @transform_15(%arg0: i32) -> (i32, i32) {
    %c0_i32 = arith.constant 0 : i32
    %c0_i32_0 = arith.constant 0 : i32
    %c0_i32_1 = arith.constant 0 : i32
    return %c0_i32, %c0_i32_0 : i32, i32
  }
  func.func @transform_16(%arg0: i32) -> (i32, i32) {
    %c0_i32 = arith.constant 0 : i32
    %c0_i32_0 = arith.constant 0 : i32
    %c0_i32_1 = arith.constant 0 : i32
    return %c0_i32, %c0_i32_0 : i32, i32
  }
  func.func @transform_17(%arg0: i32) -> (i32, i32) {
    %c0_i32 = arith.constant 0 : i32
    %c0_i32_0 = arith.constant 0 : i32
    %c0_i32_1 = arith.constant 0 : i32
    return %c0_i32, %c0_i32_0 : i32, i32
  }
  func.func @transform_18(%arg0: i32) -> (i32, i32) {
    %c0_i32 = arith.constant 0 : i32
    %c0_i32_0 = arith.constant 0 : i32
    return %arg0, %c0_i32 : i32, i32
  }
}

</mosaic_0001>

<bundles_post_ra>
// kernel: tpu_custom_call.1
= control target key start
LH: loop header
LB: loop body
LE: loop exit
PB: predicated region body
PF: predicated region fallthrough
CT: control target
= control target key end

     0   :  { %s1842_s0 = inlined_call_operand.vmem [shape: f32[16,32], index: 0, kind: input, shape index: {}]   ;;  %s1843_s1 = inlined_call_operand.vmem [shape: bf16[2,1,8], index: 1, kind: input, shape index: {}]   ;;  %s1844_s2 = inlined_call_operand.vmem [shape: bf16[32,64], index: 2, kind: input, shape index: {}]   ;;  %s1845_s3 = inlined_call_operand.vmem [shape: f32[1,64], index: 3, kind: input, shape index: {}]   ;;  %s1846_s4 = inlined_call_operand.vmem [shape: bf16[32,64], index: 4, kind: input, shape index: {}]   ;;  %s1847_s5 = inlined_call_operand.vmem [shape: f32[1,64], index: 5, kind: input, shape index: {}]   ;;  %s1848_s6 = inlined_call_operand.vmem [shape: bf16[32,64], index: 6, kind: input, shape index: {}]   ;;  %s1849_s7 = inlined_call_operand.vmem [shape: f32[1,64], index: 7, kind: input, shape index: {}]   ;;  %s1850_s8 = inlined_call_operand.vmem [shape: bf16[64,32], index: 8, kind: input, shape index: {}]   ;;  %s1851_s9 = inlined_call_operand.vmem [shape: f32[1,32], index: 9, kind: input, shape index: {}]   ;;  %s1852_s10 = inlined_call_operand.vmem [shape: f32[1,32], index: 10, kind: input, shape index: {}]   ;;  %s1853_s11 = inlined_call_operand.vmem [shape: f32[1,32], index: 11, kind: input, shape index: {}]   ;;  %s1854_s12 = inlined_call_operand.vmem [shape: bf16[32,64], index: 12, kind: input, shape index: {}]   ;;  %s1855_s13 = inlined_call_operand.vmem [shape: f32[1,64], index: 13, kind: input, shape index: {}]   ;;  %s1856_s14 = inlined_call_operand.vmem [shape: bf16[64,32], index: 14, kind: input, shape index: {}]   ;;  %s1857_s15 = inlined_call_operand.vmem [shape: f32[1,32], index: 15, kind: input, shape index: {}]   ;;  %s1858_s16 = inlined_call_operand.vmem [shape: f32[1,32], index: 16, kind: input, shape index: {}]   ;;  %s1859_s17 = inlined_call_operand.vmem [shape: f32[1,32], index: 17, kind: input, shape index: {}]   ;;  %s1860_s18 = inlined_call_operand.hbm [shape: f32[16,32], index: 18, kind: output, shape index: {}]  }
   0x1   :  { %1868 = sst [smem:[#allocation11_spill]] %s1842_s0 }
   0x2   :  { %1869 = sst [smem:[#allocation12_spill]] %s1843_s1 }
   0x3   :  { %1870 = sst [smem:[#allocation13_spill]] %s1844_s2 }
   0x4   :  { %1871 = sst [smem:[#allocation14_spill]] %s1845_s3 }
   0x5   :  { %1872 = sst [smem:[#allocation15_spill]] %s1846_s4 }
   0x6   :  { %23 = vsyncpa [#allocation3], 0 }
   0x7   :  { %25 = vsyncpa [#allocation3 + $0x1], 0  ;;  %s1609_s27 = smov 0   ;;  %s1611_s28 = smov 0  }
   0x8   :  { %s1613_s29 = smov 0   ;;  %s1615_s30 = smov 0  }
   0x9 LB: > { %1873 = sst [smem:[#allocation5_spill]] %s1492_s27  ;;  %s1630_s0 = sadd.s32 4294967295, %s1504_s30   ;;  %s1504_s30 = sphi %s1615_s30, %s1891_s30   ;;  %s1500_s29 = sphi %s1613_s29, %s1896_s29   ;;  %s1496_s28 = sphi %s1611_s28, %s1895_s28   ;;  %s1492_s27 = sphi %s1609_s27, %s1894_s27  }
   0xa   : > { %1874 = sst [smem:[#allocation6_spill]] %s1500_s29  ;;  %s1259_s19 = sadd.s32 4294967294, %s1504_s30  }
   0xb   : > { %1875 = sst [smem:[#allocation7_spill]] %s1504_s30  ;;  %s1634_s1 = sadd.s32 1, %s1504_s30  }
   0xc   : > { %1876 = sst [smem:[#allocation8_spill]] %s1634_s1  ;;  %s426_s20 = sadd.s32 1, %s1500_s29 }
   0xd   : > { %s423_s21 = ssub.s32 %s1504_s30, %s1634_s1  ;;  %p436_p0 = scmp.ne.s32.totalorder %s1500_s29, %s1496_s28 }
   0xe   : > { %p424_p1 = scmp.eq.s32.totalorder %s423_s21, 0  ;;  %p437_p2 = scmp.eq.s32.totalorder %s1630_s0, 1 }
   0xf   : > { %p442_p3 = scmp.ne.s32.totalorder %s1496_s28, %s1492_s27  ;;  %p443_p4 = scmp.eq.s32.totalorder %s1259_s19, 1 }
  0x10   : > { %s1645_s22 = scalar_select %p424_p1, %s1500_s29, %s426_s20  }
  0x11   : > { %p1647_p5 = por %p437_p2, %p436_p0  ;;  %p1651_p6 = por %p443_p4, %p442_p3 }
  0x12   : > { %1877 = sst [smem:[#allocation9_spill]] %s1645_s22  ;;  %p1262_p7 = scmp.ge.s32.totalorder %s1504_s30, 1 }
  0x13   : > { %s1879_s23 = scalar_select %p1651_p6, 1, 0 }
  0x14   : > { %p522_p8 = scmp.lt.s32.totalorder %s1504_s30, 3 }
  0x15   : > { %1880 = sst [smem:[#allocation10_spill]] %s1879_s23 }
  0x16   : > { %p523_p9 = pnand %p1262_p7, %p522_p8 }
  0x17   : > { %s1881_s26 = sld [smem:[#allocation13_spill]] (!%p523_p9)  ;;  %p578_p10 = scmp.lt.s32.totalorder (!%p523_p9), %s1630_s0, 1 }
  0x18   : > { %526 = sbr.rel (%p523_p9) target bundleno = 1886 (0x75e), region = 92  ;;  %s1882_s4 = sld [smem:[#allocation15_spill]] (!%p523_p9) }
  0x19   : > { %s1883_s30 = sld [smem:[#allocation11_spill]] (!%p523_p9)  ;;  %s1506_s27 = smov (!%p523_p9), 112  }
  0x1a   : > { %s1884_s3 = sld [smem:[#allocation14_spill]] (!%p523_p9)  ;;  %s1508_s21 = smov (!%p523_p9), 96  }
  0x1b   : > { %s1885_s25 = sld [smem:[#allocation12_spill]] (!%p523_p9) }
  0x1d   : > { %v1348_v0 = vld [vmem:[%s1881_s26 + $0x8] sm:$0xff]  ;;  %v1347_v2 = vld [vmem:[%s1881_s26] sm:$0xff]  ;;  %s1671_s23 = scalar_select %p578_p10, %s1630_s0, 1  ;;  %vm608_vm0 = vcmask 261120   ;;  %vm716_vm1 = vcmask 130048   ;;  %vm855_vm2 = vcmask 1043456  }
  0x1e   : > { %v1350_v1 = vld [vmem:[%s1882_s4 + $0x8] sm:$0xff]  ;;  %618 = vmatpush.bf16.msra.mxu0 %v1348_v0  ;;  %v1349_v3 = vld [vmem:[%s1882_s4] sm:$0xff]  ;;  %v1509_v39 = vmov 0   ;;  %vm803_vm5 = vcmask 64512   ;;  %vm953_vm6 = vcmask 392192   ;;  %vm992_vm7 = vcmask 523264  }
  0x1f   : > { %652 = vmatpush.bf16.msra.mxu1 %v1350_v1  ;;  %s1264_s24 = sshll.u32 %s1671_s23, 3  ;;  %v1411_v7 = vld [vmem:[%s1847_s5] ss:$0 sm:$0xff]  ;;  %v1352_v18 = vld [vmem:[%s1848_s6 + $0x8] sm:$0xff] }
  0x20   : > { %s581_s19 = scalar_lea.vmem %s1883_s30, %s1264_s24  ;;  %v1410_v6 = vld [vmem:[%s1884_s3] ss:$0 sm:$0xff]  ;;  %s1507_s30 = smov 80   ;;  %685 = vmatpush.bf16.msra.mxu2 %v1352_v18 }
  0x21   : > { %v1677_v4 = vld [vmem:[%s581_s19] sm:$0xff]  ;;  %s584_s19 = scalar_lea.vmem %s1885_s25, %s1671_s23  ;;  %s1510_s23 = smov 32  }
  0x22   : > { %619 = vmatpush.bf16.msra.mxu0 %v1347_v2  ;;  %v587_v5 = vpack.c.bf16 %v1677_v4, %v1677_v4  ;;  %v1351_v19 = vld [vmem:[%s1848_s6] sm:$0xff] }
  0x23   : > { %653 = vmatpush.bf16.msra.mxu1 %v1349_v3  ;;  %v1412_v31 = vld [vmem:[%s1849_s7] ss:$0 sm:$0xff] }
  0x24   : > { %686 = vmatpush.bf16.msra.mxu2 %v1351_v19  ;;  %v793_v37 = vld [vmem:[%s584_s19] sm:$0x1] }
  0x25   : > { %1273 = vmatmul.msk.bf16.vlgmr.msra.gmra.mxu0 %vm608_vm0, %v587_v5  ;;  %v794_v38 = vunpack.c.l.bf16 %v793_v37 }
  0x26   : > { %1282 = vmatmul.msk.bf16.vlgmr.msra.gmra.mxu1 %vm608_vm0, %v587_v5 }
  0x27   : > { %1291 = vmatmul.msk.bf16.vlgmr.msra.gmra.mxu2 %vm608_vm0, %v587_v5  ;;  %vm795_vm3 = vcmp.gt.f32.partialorder %v794_v38, 0.5 }
  0x28   : > { %v796_v40 = vsel %vm795_vm3, 1, %v1509_v39 }
  0x29   : > { %v797_v41 = vperm.slane %v796_v40, 0 }
  0x2b   : > { %vm1718_vm4 = vcmp.eq.s32.totalorder %v797_v41, 1 }
  0xa2   : > { %v621_v8 = vpop.f32.mrf.mxu0 }
  0xa3   : > { %v655_v9 = vpop.f32.mrf.mxu1  ;;  %v622_v10 = vadd.f32 %v1410_v6, %v621_v8 }
  0xa4   : > { %v656_v11 = vadd.f32 %v1411_v7, %v655_v9 }
  0xa5   : > { %v625_v12 = vmul.f32 0.25, %v622_v10 }
  0xa6   : > { %v700_v13 = vpack.c.bf16 %v656_v11, %v656_v11 }
  0xa7   : > { %v692_v14 = vpack.c.bf16 %v625_v12, %v625_v12 }
  0xa8   : > { %702 = vrot.lane.b32.xlu1 %v700_v13, %s1506_s27  ;;  %706 = vrot.lane.b32.xlu0 %v700_v13, %s1507_s30  ;;  %v721_v15 = vsel %vm716_vm1, %v700_v13, 0 }
  0xa9   : > { %730 = vmatpush.bf16.xpose.msra.mxu3 %v721_v15  ;;  %694 = vrot.lane.b32.xlu2 %v692_v14, %s1506_s27 }
  0xaa   : > { %v623_v16 = vpop.f32.mrf.mxu0  ;;  %v688_v32 = vpop.f32.mrf.mxu2 }
  0xab   : > { %v657_v17 = vpop.f32.mrf.mxu1  ;;  %v689_v33 = vadd.f32 %v1412_v31, %v688_v32 }
  0xad   : > { %v708_v34 = vpack.c.bf16 %v689_v33, %v689_v33 }
  0xaf   : > { %v857_v35 = vsel %vm855_vm2, %v708_v34, 0 }
  0xb0   : > { %704 = vrot.lane.b32.xlu1 %v700_v13, %s1508_s21  ;;  %698 = vrot.lane.b32.xlu0 %v692_v14, %s1507_s30 }
  0xb1   : > { %1292 = vmatmul.msk.bf16.vlgmr.msra.gmra.mxu3 %vm716_vm1, %v692_v14  ;;  %696 = vrot.lane.b32.xlu2 %v692_v14, %s1508_s21 }
  0xb2   : > { %866 = vmatpush.bf16.msrb.mxu3 %v857_v35  ;;  %v690_v36 = vpop.f32.mrf.mxu2 }
 0x103   : > { %v695_v24 = vpop.permute.xlu2 %694 }
 0x10b   : > { %v697_v28 = vpop.permute.xlu2 %696 }
 0x11a   : > { %v703_v20 = vpop.permute.xlu1 %702  ;;  %v707_v21 = vpop.permute.xlu0 %706 }
 0x11b   : > { %v740_v22 = vsel %vm716_vm1, %v703_v20, 0  ;;  %v778_v23 = vsel %vm716_vm1, %v707_v21, 0 }
 0x11c   : > { %749 = vmatpush.bf16.xpose.msrb.mxu0 %v740_v22  ;;  %787 = vmatpush.bf16.xpose.msrb.mxu2 %v778_v23 }
 0x122   : > { %v705_v25 = vpop.permute.xlu1 %704  ;;  %v699_v26 = vpop.permute.xlu0 %698 }
 0x123   : > { %1293 = vmatmul.msk.bf16.vlgmr.msrb.gmra.mxu0 %vm716_vm1, %v695_v24  ;;  %1295 = vmatmul.msk.bf16.vlgmr.msrb.gmra.mxu2 %vm716_vm1, %v699_v26  ;;  %v759_v27 = vsel %vm716_vm1, %v705_v25, 0 }
 0x124   : > { %768 = vmatpush.bf16.xpose.msrb.mxu1 %v759_v27 }
 0x12b   : > { %1294 = vmatmul.msk.bf16.vlgmr.msrb.gmra.mxu1 %vm716_vm1, %v697_v28 }
 0x134   : > { %v732_v29 = vpop.f32.mrf.mxu3 }
 0x135   : > { %v799_v54 = vsel %vm1718_vm4, -1e+09, %v732_v29 }
 0x136   : > { %v804_v56 = vsel %vm803_vm5, %v799_v54, -inf }
 0x13c   : > { %v734_v30 = vpop.f32.mrf.mxu3 }
 0x1a0   : > { %v751_v43 = vpop.f32.mrf.mxu0 }
 0x1a1   : > { %v800_v44 = vsel %vm1718_vm4, -1e+09, %v751_v43 }
 0x1a2   : > { %v807_v45 = vsel %vm803_vm5, %v800_v44, -inf }
 0x1a3   : > { %808 = vmax.xlane.f32.xlu1 %v807_v45 }
 0x1a6   : > { %v789_v46 = vpop.f32.mrf.mxu2 }
 0x1a7   : > { %v802_v47 = vsel %vm1718_vm4, -1e+09, %v789_v46 }
 0x1a8   : > { %v753_v48 = vpop.f32.mrf.mxu0  ;;  %v770_v49 = vpop.f32.mrf.mxu1  ;;  %v813_v50 = vsel %vm803_vm5, %v802_v47, -inf }
 0x1a9   : > { %v801_v51 = vsel %vm1718_vm4, -1e+09, %v770_v49  ;;  %814 = vmax.xlane.f32.xlu0 %v813_v50 }
 0x1aa   : > { %v810_v52 = vsel %vm803_vm5, %v801_v51, -inf }
 0x1ab   : > { %811 = vmax.xlane.f32.xlu2 %v810_v52  ;;  %v1356_v52 = vld [vmem:[%s1850_s8 + $0x18] sm:$0xff] }
 0x1ac   : > { %999 = vmatpush.bf16.msra.mxu3 %v1356_v52 }
 0x1ae   : > { %v791_v53 = vpop.f32.mrf.mxu2 }
 0x1af   : > { %v1355_v53 = vld [vmem:[%s1850_s8 + $0x10] sm:$0xff] }
 0x1b0   : > { %v772_v55 = vpop.f32.mrf.mxu1  ;;  %1000 = vmatpush.bf16.msra.mxu3 %v1355_v53 }
 0x1b1   : > { %v1354_v55 = vld [vmem:[%s1850_s8 + $0x8] sm:$0xff] }
 0x1b3   : > { %805 = vmax.xlane.f32.xlu2 %v804_v56  ;;  %v1353_v56 = vld [vmem:[%s1850_s8] sm:$0xff] }
 0x1b4   : > { %1001 = vmatpush.bf16.msra.mxu3 %v1354_v55 }
 0x1b8   : > { %1002 = vmatpush.bf16.msra.mxu3 %v1353_v56 }
 0x216   : > { %v809_v57 = vpop.xlane.xlu1 %808 }
 0x217   : > { %v817_v58 = vsub.f32 %v800_v44, %v809_v57 }
 0x219   : > { %v822_v59 = vmul.f32 1.442695, %v817_v58 }
 0x21b   : > { %1420 = vpow2.f32 %v822_v59 }
 0x21c   : > { %v815_v60 = vpop.xlane.xlu0 %814 }
 0x21d   : > { %v819_v61 = vsub.f32 %v802_v47, %v815_v60 }
 0x21e   : > { %v812_v62 = vpop.xlane.xlu2 %811 }
 0x21f   : > { %v826_v63 = vmul.f32 1.442695, %v819_v61  ;;  %v818_v0 = vsub.f32 %v801_v51, %v812_v62 }
 0x221   : > { %v1421_v1 = vpop.eup %1420  ;;  %1422 = vpow2.f32 %v826_v63  ;;  %v824_v2 = vmul.f32 1.442695, %v818_v0  ;;  %v1413_v0 = vld [vmem:[%s1851_s9] ss:$0 sm:$0xff] }
 0x222   : > { %v831_v3 = vsel %vm803_vm5, %v1421_v1, 0.0 }
 0x223   : > { %1424 = vpow2.f32 %v824_v2  ;;  %832 = vadd.xlane.f32.xlu1 %v831_v3 }
 0x226   : > { %v806_v9 = vpop.xlane.xlu2 %805 }
 0x227   : > { %v1423_v5 = vpop.eup %1422  ;;  %v816_v10 = vsub.f32 %v799_v54, %v806_v9 }
 0x228   : > { %v837_v6 = vsel %vm803_vm5, %v1423_v5, 0.0 }
 0x229   : > { %v1425_v7 = vpop.eup %1424  ;;  %838 = vadd.xlane.f32.xlu0 %v837_v6  ;;  %v820_v11 = vmul.f32 1.442695, %v816_v10 }
 0x22a   : > { %v834_v8 = vsel %vm803_vm5, %v1425_v7, 0.0 }
 0x22b   : > { %835 = vadd.xlane.f32.xlu2 %v834_v8  ;;  %1426 = vpow2.f32 %v820_v11 }
 0x231   : > { %v1427_v12 = vpop.eup %1426 }
 0x232   : > { %v828_v13 = vsel %vm803_vm5, %v1427_v12, 0.0 }
 0x23c   : > { %710 = vrot.lane.b32.xlu1 %v708_v34, %s1506_s27  ;;  %s1511_s27 = smov 16  }
 0x23d   : > { %714 = vrot.lane.b32.xlu0 %v708_v34, %s1507_s30  ;;  %s1512_s30 = smov 48  }
 0x243   : > { %712 = vrot.lane.b32.xlu2 %v708_v34, %s1508_s21 }
 0x267   : > { %829 = vadd.xlane.f32.xlu0 %v828_v13 }
 0x296   : > { %v833_v15 = vpop.xlane.xlu1 %832 }
 0x29c   : > { %v839_v16 = vpop.xlane.xlu0 %838 }
 0x29e   : > { %v836_v14 = vpop.xlane.xlu2 %835 }
 0x29f   : > { %1428 = vrcp.f32 %v836_v14 }
 0x2a0   : > { %1430 = vrcp.f32 %v833_v15 }
 0x2a1   : > { %1432 = vrcp.f32 %v839_v16 }
 0x2a5   : > { %v1429_v17 = vpop.eup %1428 }
 0x2a6   : > { %v846_v18 = vmul.f32 %v1429_v17, %v1425_v7  ;;  %v713_v19 = vpop.permute.xlu2 %712  ;;  %v1431_v22 = vpop.eup %1430  ;;  %v1513_v7 = vmov 32.0  }
 0x2a7   : > { %v895_v20 = vsel %vm855_vm2, %v713_v19, 0  ;;  %v1433_v23 = vpop.eup %1432  ;;  %v845_v24 = vmul.f32 %v1431_v22, %v1421_v1  ;;  %v1357_v19 = vld [vmem:[%s1854_s12] sm:$0xff] }
 0x2a8   : > { %v850_v21 = vpack.c.bf16 %v846_v18, %v846_v18  ;;  %904 = vmatpush.bf16.msra.mxu1 %v895_v20  ;;  %v847_v25 = vmul.f32 %v1433_v23, %v1423_v5  ;;  %v1362_v20 = vld [vmem:[%s1856_s14 + $0x18] sm:$0xff]  ;;  %v1361_v23 = vld [vmem:[%s1856_s14 + $0x10] sm:$0xff] }
 0x2a9   : > { %v849_v30 = vpack.c.bf16 %v845_v24, %v845_v24 }
 0x2aa   : > { %v851_v31 = vpack.c.bf16 %v847_v25, %v847_v25 }
 0x2ab   : > { %1298 = vmatmul.msk.bf16.vlgmr.msra.gmra.mxu1 %vm803_vm5, %v850_v21 }
 0x2ac   : > { %1131 = vmatpush.bf16.msrb.mxu1 %v1362_v20 }
 0x2ae   : > { %v711_v26 = vpop.permute.xlu1 %710 }
 0x2af   : > { %v876_v27 = vsel %vm855_vm2, %v711_v26, 0  ;;  %v715_v28 = vpop.permute.xlu0 %714 }
 0x2b0   : > { %v914_v29 = vsel %vm855_vm2, %v715_v28, 0  ;;  %885 = vmatpush.bf16.msra.mxu0 %v876_v27  ;;  %1132 = vmatpush.bf16.msrb.mxu1 %v1361_v23 }
 0x2b1   : > { %923 = vmatpush.bf16.msra.mxu2 %v914_v29 }
 0x2b3   : > { %1297 = vmatmul.msk.bf16.vlgmr.msra.gmra.mxu0 %vm803_vm5, %v849_v30 }
 0x2b4   : > { %1299 = vmatmul.msk.bf16.vlgmr.msra.gmra.mxu2 %vm803_vm5, %v851_v31  ;;  %v1414_v31 = vld [vmem:[%s1852_s10] ss:$0 sm:$0xff] }
 0x2da   : > { %v830_v32 = vpop.xlane.xlu0 %829 }
 0x2db   : > { %1434 = vrcp.f32 %v830_v32 }
 0x2dc   : > { %1436 = vrcp.f32 %v1513_v7 }
 0x2e1   : > { %v1435_v33 = vpop.eup %1434 }
 0x2e2   : > { %v844_v34 = vmul.f32 %v1435_v33, %v1427_v12  ;;  %v1437_v8 = vpop.eup %1436  ;;  %v1415_v33 = vld [vmem:[%s1853_s11] ss:$0 sm:$0xff] }
 0x2e3   : > { %v1015_v9 = vmul.f32 32.0, %v1437_v8  ;;  %vm1019_vm8 = vweird.f32 %v1437_v8 }
 0x2e4   : > { %v848_v35 = vpack.c.bf16 %v844_v34, %v844_v34 }
 0x2e5   : > { %v1016_v10 = vsub.f32 1.0, %v1015_v9 }
 0x2e6   : > { %1296 = vmatmul.msk.bf16.vlgmr.msrb.gmra.mxu3 %vm803_vm5, %v848_v35 }
 0x2e7   : > { %v1017_v11 = vmul.f32 %v1437_v8, %v1016_v10 }
 0x2e9   : > { %v1018_v12 = vadd.f32 %v1437_v8, %v1017_v11 }
 0x2eb   : > { %v1020_v13 = vsel %vm1019_vm8, %v1437_v8, %v1018_v12 }
 0x328   : > { %v906_v36 = vpop.f32.mrf.mxu1 }
 0x329   : > { %v931_v37 = vpack.c.bf16 %v906_v36, %v906_v36 }
 0x32b   : > { %v939_v38 = vunpack.c.l.b16 %v931_v37 }
 0x32d   : > { %v940_v39 = vpack.c.b16 %v939_v38, %v939_v38  ;;  %v1360_v38 = vld [vmem:[%s1856_s14 + $0x8] sm:$0xff] }
 0x32e   : > { %1133 = vmatpush.bf16.msrb.mxu1 %v1360_v38 }
 0x32f   : > { %941 = vrot.lane.b32.xlu2 %v940_v39, %s1510_s23  ;;  %v1359_v39 = vld [vmem:[%s1856_s14] sm:$0xff]  ;;  %s575_s23 = sand.u32 1, %s1496_s28  }
 0x330   : > { %v887_v40 = vpop.f32.mrf.mxu0  ;;  %v908_v41 = vpop.f32.mrf.mxu1  ;;  %s1176_s21 = scalar_lea.sflag [#allocation3], %s575_s23 }
 0x331   : > { %v930_v42 = vpack.c.bf16 %v887_v40, %v887_v40  ;;  %v1416_v40 = vld [vmem:[%s1855_s13] ss:$0 sm:$0xff] }
 0x332   : > { %1134 = vmatpush.bf16.msrb.mxu1 %v1359_v39 }
 0x333   : > { %v934_v43 = vunpack.c.l.b16 %v930_v42 }
 0x335   : > { %v935_v44 = vpack.c.b16 %v934_v43, %v934_v43 }
 0x337   : > { %936 = vrot.lane.b32.xlu1 %v935_v44, %s1511_s27  ;;  %v925_v45 = vpop.f32.mrf.mxu2  ;;  %s1263_s27 = sshll.u32 %s575_s23, 3 }
 0x338   : > { %v932_v46 = vpack.c.bf16 %v925_v45, %v925_v45  ;;  %v889_v47 = vpop.f32.mrf.mxu0  ;;  %s577_s19 = scalar_lea.vmem [#allocation2], %s1263_s27  ;;  %s1462_s27 = scalar_lea.hbm %s1860_s18, 16 }
 0x33a   : > { %v944_v48 = vunpack.c.l.b16 %v932_v46  ;;  %v1417_v46 = vld [vmem:[%s1857_s15] ss:$0 sm:$0xff] }
 0x33c   : > { %v945_v49 = vpack.c.b16 %v944_v48, %v944_v48 }
 0x33f   : > { %946 = vrot.lane.b32.xlu1 %v945_v49, %s1512_s30  ;;  %v927_v50 = vpop.f32.mrf.mxu2  ;;  %s1344_s30 = sshll.u32 %s1630_s0, 3  ;;  %s1188_s0 = sshll.u32 %s577_s19, 4  ;;  %s1189_s0 = int_to_ptr.vmem [resolvable:$true] %s1188_s0 }
 0x340   : > { %s1186_s20 = scalar_lea.hbm %s1860_s18, %s1344_s30 }
 0x341   : > { %s1190_s3 = sshll.u32 %s1186_s20, 4  ;;  %s1191_s3 = int_to_ptr.hbm [resolvable:$true] %s1190_s3 }
 0x342   : > { %s1456_s29 = sshra.s32 %s1191_s3, 4  ;;  %s1457_s29 = int_to_ptr.hbm [resolvable:$true] %s1456_s29 }
 0x343   : > { %s1458_s30 = scalar_lea.hbm %s1457_s29, 8  ;;  %p1463_p0 = scmp.lt.s32.totalorder %s1457_s29, %s1860_s18 }
 0x344   : > { %p1459_p11 = scmp.ne.s32.totalorder %s1457_s29, %s1458_s30  ;;  %p1464_p1 = scmp.lt.s32.totalorder %s1462_s27, %s1458_s30 }
 0x346   : > { %p1460_p12 = pnand %p1459_p11, %p1647_p5  ;;  %p1465_p2 = por %p1464_p1, %p1463_p0 }
 0x348   : > { %p1461_p13 = pneg %p1460_p12 }
 0x34a   : > { %p1466_p3 = pnand %p1465_p2, %p1461_p13 }
 0x369   : > { %v868_v51 = vpop.f32.mrf.mxu3 }
 0x36a   : > { %v929_v58 = vpack.c.bf16 %v868_v51, %v868_v51 }
 0x371   : > { %v870_v54 = vpop.f32.mrf.mxu3 }
 0x389   : > { %v942_v60 = vpop.permute.xlu2 %941 }
 0x3a9   : > { %v937_v57 = vpop.permute.xlu1 %936 }
 0x3aa   : > { %v950_v59 = vsel %vm716_vm1, %v929_v58, %v937_v57 }
 0x3ab   : > { %v952_v62 = vsel %vm608_vm0, %v950_v59, %v942_v60 }
 0x3b1   : > { %v947_v61 = vpop.permute.xlu1 %946 }
 0x3b2   : > { %v955_v63 = vsel %vm953_vm6, %v952_v62, %v947_v61 }
 0x3b3   : > { %1316 = vmatmul.msk.bf16.vlgmr.msra.gmra.mxu3 %vm992_vm7, %v955_v63 }
 0x436   : > { %v1004_v1 = vpop.f32.mrf.mxu3 }
 0x437   : > { %v1005_v2 = vadd.f32 %v1413_v0, %v1004_v1 }
 0x439   : > { %v1008_v3 = vadd.f32 %v1005_v2, %v1677_v4  ;;  %v1358_v4 = vld [vmem:[%s1854_s12 + $0x8] sm:$0xff]  ;;  %v1418_v2 = vld [vmem:[%s1858_s16] ss:$0 sm:$0xff] }
 0x43a   : > { %1083 = vmatpush.bf16.msrb.mxu0 %v1358_v4 }
 0x43b   : > { %v1011_v5 = vsel %vm608_vm0, %v1008_v3, 0.0 }
 0x43c   : > { %1012 = vadd.xlane.f32.xlu2 %v1011_v5 }
 0x43e   : > { %v1006_v6 = vpop.f32.mrf.mxu3  ;;  %1084 = vmatpush.bf16.msrb.mxu0 %v1357_v19 }
 0x43f   : > { %v1419_v6 = vld [vmem:[%s1859_s17] ss:$0 sm:$0xff] }
 0x4af   : > { %v1013_v14 = vpop.xlane.xlu2 %1012 }
 0x4b0   : > { %v1021_v15 = vmul.f32 %v1020_v13, %v1013_v14 }
 0x4b2   : > { %v1022_v16 = vsub.f32 %v1008_v3, %v1021_v15 }
 0x4b4   : > { %v1023_v17 = vmul.f32 %v1022_v16, %v1022_v16 }
 0x4b6   : > { %v1024_v18 = vsel %vm608_vm0, %v1023_v17, 0.0 }
 0x4b7   : > { %1025 = vadd.xlane.f32.xlu1 %v1024_v18 }
 0x52a   : > { %v1026_v21 = vpop.xlane.xlu1 %1025 }
 0x52b   : > { %v1027_v22 = vmul.f32 %v1026_v21, %v1020_v13 }
 0x52d   : > { %v1028_v24 = vadd.f32 1e-05, %v1027_v22 }
 0x52f   : > { %1438 = vrsqrt.f32 %v1028_v24  ;;  %vm1035_vm10 = vweird.f32 %v1028_v24 }
 0x535   : > { %v1439_v25 = vpop.eup %1438 }
 0x536   : > { %v1030_v26 = vmul.f32 %v1439_v25, %v1028_v24  ;;  %vm1036_vm9 = vweird.f32 %v1439_v25 }
 0x537   : > { %vm1037_vm11 = vmor %vm1035_vm10, %vm1036_vm9 }
 0x538   : > { %v1031_v27 = vmul.f32 %v1439_v25, %v1030_v26 }
 0x53a   : > { %v1032_v28 = vmul.f32 0.5, %v1031_v27 }
 0x53c   : > { %v1033_v29 = vsub.f32 1.5, %v1032_v28 }
 0x53e   : > { %v1034_v30 = vmul.f32 %v1439_v25, %v1033_v29 }
 0x540   : > { %v1038_v32 = vsel %vm1037_vm11, %v1439_v25, %v1034_v30 }
 0x541   : > { %v1039_v34 = vmul.f32 %v1038_v32, %v1022_v16 }
 0x543   : > { %v1043_v35 = vmul.f32 %v1414_v31, %v1039_v34 }
 0x545   : > { %v1047_v36 = vadd.f32 %v1415_v33, %v1043_v35 }
 0x547   : > { %v1048_v37 = vpack.c.bf16 %v1047_v36, %v1047_v36 }
 0x549   : > { %1325 = vmatmul.msk.bf16.vlgmr.msrb.gmra.mxu0 %vm608_vm0, %v1048_v37 }
 0x5c6   : > { %v1086_v41 = vpop.f32.mrf.mxu0 }
 0x5c7   : > { %v1087_v42 = vadd.f32 %v1416_v40, %v1086_v41 }
 0x5c9   : > { %v1090_v43 = vmax.f32 %v1087_v42, 0.0 }
 0x5cb   : > { %v1091_v44 = vpack.c.bf16 %v1090_v43, %v1090_v43 }
 0x5cd   : > { %1342 = vmatmul.msk.bf16.vlgmr.msrb.gmra.mxu1 %vm992_vm7, %v1091_v44 }
 0x5ce   : > { %v1088_v45 = vpop.f32.mrf.mxu0 }
 0x64a   : > { %v1136_v47 = vpop.f32.mrf.mxu1 }
 0x64b   : > { %v1140_v48 = vadd.f32 %v1417_v46, %v1136_v47 }
 0x64d   : > { %v1141_v49 = vadd.f32 %v1140_v48, %v1047_v36 }
 0x64f   : > { %v1144_v50 = vsel %vm608_vm0, %v1141_v49, 0.0 }
 0x650   : > { %1145 = vadd.xlane.f32.xlu0 %v1144_v50 }
 0x652   : > { %v1138_v51 = vpop.f32.mrf.mxu1 }
 0x6c3   : > { %v1146_v52 = vpop.xlane.xlu0 %1145 }
 0x6c4   : > { %v1147_v53 = vmul.f32 %v1146_v52, %v1020_v13 }
 0x6c6   : > { %v1148_v54 = vsub.f32 %v1141_v49, %v1147_v53 }
 0x6c8   : > { %v1149_v55 = vmul.f32 %v1148_v54, %v1148_v54 }
 0x6ca   : > { %v1150_v56 = vsel %vm608_vm0, %v1149_v55, 0.0 }
 0x6cb   : > { %1151 = vadd.xlane.f32.xlu0 %v1150_v56 }
 0x73e   : > { %v1152_v57 = vpop.xlane.xlu0 %1151 }
 0x73f   : > { %v1153_v58 = vmul.f32 %v1152_v57, %v1020_v13 }
 0x741   : > { %v1154_v59 = vadd.f32 1e-05, %v1153_v58 }
 0x743   : > { %1440 = vrsqrt.f32 %v1154_v59  ;;  %vm1161_vm13 = vweird.f32 %v1154_v59 }
 0x749   : > { %v1441_v60 = vpop.eup %1440 }
 0x74a   : > { %v1156_v61 = vmul.f32 %v1441_v60, %v1154_v59  ;;  %vm1162_vm12 = vweird.f32 %v1441_v60 }
 0x74b   : > { %vm1163_vm14 = vmor %vm1161_vm13, %vm1162_vm12 }
 0x74c   : > { %v1157_v62 = vmul.f32 %v1441_v60, %v1156_v61 }
 0x74e   : > { %v1158_v63 = vmul.f32 0.5, %v1157_v62 }
 0x750   : > { %v1159_v0 = vsub.f32 1.5, %v1158_v63 }
 0x752   : > { %v1160_v1 = vmul.f32 %v1441_v60, %v1159_v0 }
 0x754   : > { %v1164_v3 = vsel %vm1163_vm14, %v1441_v60, %v1160_v1 }
 0x755   : > { %v1165_v5 = vmul.f32 %v1164_v3, %v1148_v54 }
 0x757   : > { %v1169_v7 = vmul.f32 %v1418_v2, %v1165_v5 }
 0x759   : > { %v1173_v8 = vadd.f32 %v1419_v6, %v1169_v7 }
 0x75b   : > { %1174 = vst.msk [vmem:[%s577_s19] sm:$0xff] %vm608_vm0, %v1173_v8 }
 0x75c   : > { %1469 = shalt.err (!%p1466_p3)
}
 0x75d   : > { %1363 = dma.vmem_to_hbm [thread:$0]  (%p1647_p5), %s1189_s0, 128, %s1191_s3, %s1176_s21  }
 0x75e PF: > { %s1888_s23 = sld [smem:[#allocation7_spill]] }
 0x75f   : > { %s1889_s25 = sld [smem:[#allocation5_spill]] }
 0x764   : > { %p1369_p4 = scmp.ge.s32.totalorder %s1888_s23, 2 }
 0x765   : > { %s1202_s4 = sand.u32 1, %s1889_s25  }
 0x766   : > { %p1366_p7 = pnand %p1369_p4, %p1651_p6  ;;  %s1203_s1 = scalar_lea.sflag [#allocation3], %s1202_s4 }
 0x768   : > { %p1367_p8 = pneg %p1366_p7 }
 0x76a   : > { %1487 = dma.done.wait (%p1367_p8), %s1203_s1, 128  }
 0x76b   : > { %1489 = vsyncadd (%p1367_p8), %s1203_s1, 4294967168  ;;  %s1891_s30 = sld [smem:[#allocation8_spill]]  ;;  %s1894_s27 = smov %s1496_s28 }
 0x76c   : > { %s1892_s29 = sld [smem:[#allocation6_spill]] }
 0x76d   : > { %s1893_s22 = sld [smem:[#allocation9_spill]] }
 0x771   : > { %p28_p9 = scmp.ge.s32.totalorder %s1891_s30, 4  }
 0x772   : > { %s1895_s28 = smov %s1892_s29 }
 0x773   : > { %s1896_s29 = smov %s1893_s22  ;;  %30 = sbr.rel (!%p28_p9) target bundleno = 9 (0x9), region = 130 }
 0x778   :  { %1209 = vsyncpa [#allocation3], 1 }
 0x779   :  { %1211 = vsyncpa [#allocation3 + $0x1], 1 }

</bundles_post_ra>
